<compile_context>
chip_gen: v7x
topology: tpu7x:2x2x1
jax: 0.10.0
libtpu: 0.0.40
codegen_flags: <defaults>
</compile_context>

<pallas_src>
import jax
import jax.numpy as jnp
from jax.experimental import pallas as pl
from jax.experimental.pallas import tpu as pltpu


def _round_up(x, m):
    return ((x + m - 1) // m) * m


def make_mlp_kernel(num_hidden_layers):
    """Fused kernel: `num_hidden_layers` x (Linear + ReLU) + Linear(., 1)."""

    def kernel(x_ref, *refs):
        # refs = (w0, b0, w1, b1, ..., w_out_row, b_out, o_ref)
        o_ref = refs[-1]
        params = refs[:-1]

        h = x_ref[...]
        if h.dtype != jnp.float32:
            h = h.astype(jnp.float32)

        for i in range(num_hidden_layers):
            w = params[2 * i][...]
            b = params[2 * i + 1][...]
            h = jnp.dot(h, w, preferred_element_type=jnp.float32) + b
            h = jnp.maximum(h, 0.0)  # ReLU

        # Final Linear(hidden[-1], 1): broadcast-multiply + lane reduction
        # on the VPU/XLU instead of a 1-column MXU matmul.
        w_out_row = params[2 * num_hidden_layers][...]      # (1, hidden[-1])
        b_out = params[2 * num_hidden_layers + 1][...]      # (1, 1)
        o = jnp.sum(h * w_out_row, axis=-1, keepdims=True) + b_out
        o_ref[...] = o.astype(o_ref.dtype)

    return kernel


def value_network_forward(x, weights, biases, *, max_batch_tile=1024):
    """x: (batch, state_size) f32.
    weights: list of (in, out) f32 arrays (hidden layers + output layer,
             output layer stored as (hidden[-1], 1)).
    biases:  list of (1, out) f32 arrays.
    Returns (batch, 1) f32."""
    num_hidden = len(weights) - 1
    batch, state_size = x.shape

    # Pre-reshape the output weight (fan_in, 1) -> (1, fan_in) once in the
    # wrapper (outside the kernel) so no in-kernel transpose is needed.
    w_out_row = weights[-1].reshape(1, -1)

    params = []
    for w, b in zip(weights[:-1], biases[:-1]):
        params += [w, b]
    params += [w_out_row, biases[-1]]

    # Batch tile: stream x / out through VMEM in TB-row blocks (sublane
    # aligned).  For realistic RL batches this pipelines; for tiny batches it
    # degenerates to a single grid step.
    TB = min(_round_up(batch, 8), max_batch_tile)
    grid = (pl.cdiv(batch, TB),)

    x_spec = pl.BlockSpec((TB, state_size), lambda i: (i, 0))
    out_spec = pl.BlockSpec((TB, 1), lambda i: (i, 0))
    # Parameters: full-array blocks with a constant index_map -> fetched once,
    # VMEM-resident across all grid steps.
    param_specs = [pl.BlockSpec(p.shape, lambda i: (0, 0)) for p in params]

    # Explicit VMEM budget: params + double-buffered x/out tiles + activation
    # slack; capped at 48 MiB so it is safe on v7x's 64 MiB physical VMEM.
    param_bytes = sum(int(p.size) * p.dtype.itemsize for p in params)
    widths = [state_size] + [w.shape[1] for w in weights[:-1]] + [1]
    act_bytes = TB * max(widths) * 4 * 4
    io_bytes = 2 * TB * state_size * x.dtype.itemsize + 2 * TB * 4
    vmem_limit = param_bytes + act_bytes + io_bytes + (1 << 20)
    vmem_limit = int(min(max(vmem_limit, 32 * 1024 * 1024), 48 * 1024 * 1024))

    kernel = make_mlp_kernel(num_hidden)

    return pl.pallas_call(
        kernel,
        out_shape=jax.ShapeDtypeStruct((batch, 1), jnp.float32),
        grid=grid,
        in_specs=[x_spec] + param_specs,
        out_specs=out_spec,
        compiler_params=pltpu.CompilerParams(
            dimension_semantics=("parallel",),
            vmem_limit_bytes=vmem_limit,
        ),
    )(x, *params)


def init_value_network_params(key, state_size, hidden_layers_size):
    """Deterministic init matching the PyTorch module's parameter shapes.
    nn.Linear(in, out) -> weight (out, in), bias (out,).  We store the weight
    transposed as (in, out) and the bias as (1, out)."""
    sizes = [state_size] + list(hidden_layers_size)
    weights, biases = [], []
    for i in range(len(hidden_layers_size)):
        fan_in, fan_out = sizes[i], sizes[i + 1]
        key, kw, kb = jax.random.split(key, 3)
        bound = 1.0 / jnp.sqrt(jnp.float32(fan_in))
        weights.append(jax.random.uniform(
            kw, (fan_in, fan_out), jnp.float32, -bound, bound))
        biases.append(jax.random.uniform(
            kb, (1, fan_out), jnp.float32, -bound, bound))
    # output layer: Linear(hidden[-1], 1)
    fan_in = hidden_layers_size[-1]
    key, kw, kb = jax.random.split(key, 3)
    bound = 1.0 / jnp.sqrt(jnp.float32(fan_in))
    weights.append(jax.random.uniform(
        kw, (fan_in, 1), jnp.float32, -bound, bound))
    biases.append(jax.random.uniform(
        kb, (1, 1), jnp.float32, -bound, bound))
    return weights, biases


def reference_forward(x, weights, biases):
    """Plain-JAX reference mirroring the PyTorch forward."""
    h = x
    for w, b in zip(weights[:-1], biases[:-1]):
        h = jnp.maximum(h @ w + b, 0.0)
    return h @ weights[-1] + biases[-1]


if __name__ == "__main__":
    key = jax.random.PRNGKey(0)

    batch = 8
    state_size = 32
    hidden_layers_size = [64, 32]

    key, kx, kp = jax.random.split(key, 3)
    x = jax.random.normal(kx, (batch, state_size), jnp.float32)
    weights, biases = init_value_network_params(
        kp, state_size, hidden_layers_size)

    out = value_network_forward(x, weights, biases)
    out = jax.block_until_ready(out)

    ref = reference_forward(x, weights, biases)
    assert out.shape == (batch, 1), out.shape
    assert jnp.allclose(out, ref, atol=1e-5, rtol=1e-5), (out, ref)

    print("KERNEL_OK")
</pallas_src>

<mosaic_0001>
module attributes {stable_mosaic.version = 11 : i64} {
  func.func @kernel(%arg0: i32, %arg1: memref<8x32xf32, #tpu.memory_space<vmem>>, %arg2: memref<32x64xf32, #tpu.memory_space<vmem>>, %arg3: memref<1x64xf32, #tpu.memory_space<vmem>>, %arg4: memref<64x32xf32, #tpu.memory_space<vmem>>, %arg5: memref<1x32xf32, #tpu.memory_space<vmem>>, %arg6: memref<1x32xf32, #tpu.memory_space<vmem>>, %arg7: memref<1x1xf32, #tpu.memory_space<vmem>>, %arg8: memref<8x1xf32, #tpu.memory_space<vmem>>) attributes {dimension_semantics = [#tpu.dimension_semantics<parallel>], iteration_bounds = array<i64: 1>, scalar_prefetch = 0 : i64, scratch_operands = 0 : i64, tpu.core_type = #tpu.core_type<tc>, window_params = [{transform_indices = @transform_0, window_bounds = array<i64: 8, 32>}, {pipeline_mode = #tpu.pipeline_mode<synchronous>, transform_indices = @transform_1, window_bounds = array<i64: 32, 64>}, {pipeline_mode = #tpu.pipeline_mode<synchronous>, transform_indices = @transform_2, window_bounds = array<i64: 1, 64>}, {pipeline_mode = #tpu.pipeline_mode<synchronous>, transform_indices = @transform_3, window_bounds = array<i64: 64, 32>}, {pipeline_mode = #tpu.pipeline_mode<synchronous>, transform_indices = @transform_4, window_bounds = array<i64: 1, 32>}, {pipeline_mode = #tpu.pipeline_mode<synchronous>, transform_indices = @transform_5, window_bounds = array<i64: 1, 32>}, {pipeline_mode = #tpu.pipeline_mode<synchronous>, transform_indices = @transform_6, window_bounds = array<i64: 1, 1>}, {transform_indices = @transform_7, window_bounds = array<i64: 8, 1>}]} {
    %c0 = arith.constant 0 : index
    %c0_0 = arith.constant 0 : index
    %0 = vector.load %arg1[%c0, %c0_0] : memref<8x32xf32, #tpu.memory_space<vmem>>, vector<8x32xf32>
    %c0_1 = arith.constant 0 : index
    %c0_2 = arith.constant 0 : index
    %1 = vector.load %arg2[%c0_1, %c0_2] : memref<32x64xf32, #tpu.memory_space<vmem>>, vector<32x64xf32>
    %c0_3 = arith.constant 0 : index
    %c0_4 = arith.constant 0 : index
    %2 = vector.load %arg3[%c0_3, %c0_4] : memref<1x64xf32, #tpu.memory_space<vmem>>, vector<1x64xf32>
    %cst = arith.constant dense<0.000000e+00> : vector<8x64xf32>
    %3 = tpu.matmul %0, %1, %cst {dimension_numbers = #tpu.dot_dimension_numbers<[1], [0], [0], [1], [0, 0, 1, 1], [], []>} : vector<8x32xf32>, vector<32x64xf32>, vector<8x64xf32> -> vector<8x64xf32>
    %4 = vector.broadcast %2 : vector<1x64xf32> to vector<8x64xf32>
    %5 = arith.addf %3, %4 : vector<8x64xf32>
    %cst_5 = arith.constant 0.000000e+00 : f32
    %6 = vector.broadcast %cst_5 : f32 to vector<8x64xf32>
    %7 = arith.maximumf %5, %6 : vector<8x64xf32>
    %c0_6 = arith.constant 0 : index
    %c0_7 = arith.constant 0 : index
    %8 = vector.load %arg4[%c0_6, %c0_7] : memref<64x32xf32, #tpu.memory_space<vmem>>, vector<64x32xf32>
    %c0_8 = arith.constant 0 : index
    %c0_9 = arith.constant 0 : index
    %9 = vector.load %arg5[%c0_8, %c0_9] : memref<1x32xf32, #tpu.memory_space<vmem>>, vector<1x32xf32>
    %cst_10 = arith.constant dense<0.000000e+00> : vector<8x32xf32>
    %10 = tpu.matmul %7, %8, %cst_10 {dimension_numbers = #tpu.dot_dimension_numbers<[1], [0], [0], [1], [0, 0, 1, 1], [], []>} : vector<8x64xf32>, vector<64x32xf32>, vector<8x32xf32> -> vector<8x32xf32>
    %11 = vector.broadcast %9 : vector<1x32xf32> to vector<8x32xf32>
    %12 = arith.addf %10, %11 : vector<8x32xf32>
    %cst_11 = arith.constant 0.000000e+00 : f32
    %13 = vector.broadcast %cst_11 : f32 to vector<8x32xf32>
    %14 = arith.maximumf %12, %13 : vector<8x32xf32>
    %c0_12 = arith.constant 0 : index
    %c0_13 = arith.constant 0 : index
    %15 = vector.load %arg6[%c0_12, %c0_13] : memref<1x32xf32, #tpu.memory_space<vmem>>, vector<1x32xf32>
    %c0_14 = arith.constant 0 : index
    %c0_15 = arith.constant 0 : index
    %16 = vector.load %arg7[%c0_14, %c0_15] : memref<1x1xf32, #tpu.memory_space<vmem>>, vector<1x1xf32>
    %17 = vector.broadcast %15 : vector<1x32xf32> to vector<8x32xf32>
    %18 = arith.mulf %14, %17 : vector<8x32xf32>
    %cst_16 = arith.constant dense<0.000000e+00> : vector<8xf32>
    %19 = vector.multi_reduction <add>, %18, %cst_16 [1] : vector<8x32xf32> to vector<8xf32>
    %20 = vector.shape_cast %19 : vector<8xf32> to vector<8x1xf32>
    %21 = vector.broadcast %16 : vector<1x1xf32> to vector<8x1xf32>
    %22 = arith.addf %20, %21 : vector<8x1xf32>
    %c0_17 = arith.constant 0 : index
    %c0_18 = arith.constant 0 : index
    %23 = vector.load %arg8[%c0_17, %c0_18] : memref<8x1xf32, #tpu.memory_space<vmem>>, vector<8x1xf32>
    tpu.vector_store %arg8[%c0_17, %c0_18], %22 {strides = array<i32>} : memref<8x1xf32, #tpu.memory_space<vmem>>, vector<8x1xf32>,
    return
  }
  func.func @transform_0(%arg0: i32) -> (i32, i32) {
    %c0_i32 = arith.constant 0 : i32
    %c0_i32_0 = arith.constant 0 : i32
    return %arg0, %c0_i32 : i32, i32
  }
  func.func @transform_1(%arg0: i32) -> (i32, i32) {
    %c0_i32 = arith.constant 0 : i32
    %c0_i32_0 = arith.constant 0 : i32
    %c0_i32_1 = arith.constant 0 : i32
    return %c0_i32, %c0_i32_0 : i32, i32
  }
  func.func @transform_2(%arg0: i32) -> (i32, i32) {
    %c0_i32 = arith.constant 0 : i32
    %c0_i32_0 = arith.constant 0 : i32
    %c0_i32_1 = arith.constant 0 : i32
    return %c0_i32, %c0_i32_0 : i32, i32
  }
  func.func @transform_3(%arg0: i32) -> (i32, i32) {
    %c0_i32 = arith.constant 0 : i32
    %c0_i32_0 = arith.constant 0 : i32
    %c0_i32_1 = arith.constant 0 : i32
    return %c0_i32, %c0_i32_0 : i32, i32
  }
  func.func @transform_4(%arg0: i32) -> (i32, i32) {
    %c0_i32 = arith.constant 0 : i32
    %c0_i32_0 = arith.constant 0 : i32
    %c0_i32_1 = arith.constant 0 : i32
    return %c0_i32, %c0_i32_0 : i32, i32
  }
  func.func @transform_5(%arg0: i32) -> (i32, i32) {
    %c0_i32 = arith.constant 0 : i32
    %c0_i32_0 = arith.constant 0 : i32
    %c0_i32_1 = arith.constant 0 : i32
    return %c0_i32, %c0_i32_0 : i32, i32
  }
  func.func @transform_6(%arg0: i32) -> (i32, i32) {
    %c0_i32 = arith.constant 0 : i32
    %c0_i32_0 = arith.constant 0 : i32
    %c0_i32_1 = arith.constant 0 : i32
    return %c0_i32, %c0_i32_0 : i32, i32
  }
  func.func @transform_7(%arg0: i32) -> (i32, i32) {
    %c0_i32 = arith.constant 0 : i32
    %c0_i32_0 = arith.constant 0 : i32
    return %arg0, %c0_i32 : i32, i32
  }
}

</mosaic_0001>

<bundles_post_ra>
// kernel: tpu_custom_call.1
= control target key start
LH: loop header
LB: loop body
LE: loop exit
PB: predicated region body
PF: predicated region fallthrough
CT: control target
= control target key end

     0   :  { %v301_v0 = vmov 0.0|0.0   ;;  %vm302_vm0 = vmmov 0   ;;  %v303_v4 = vmov 0.0   ;;  %vm40_vm1 = vcmask 261120   ;;  %s400_s1 = inlined_call_operand.vmem [shape: f32[32,64], index: 1, kind: input, shape index: {}]   ;;  %s401_s3 = inlined_call_operand.vmem [shape: f32[64,32], index: 3, kind: input, shape index: {}]   ;;  %s402_s0 = inlined_call_operand.vmem [shape: f32[8,32], index: 0, kind: input, shape index: {}]   ;;  %s403_s2 = inlined_call_operand.vmem [shape: f32[1,64], index: 2, kind: input, shape index: {}]   ;;  %s404_s6 = inlined_call_operand.<no memory space> [shape: f32[1,1], index: 6, kind: input, shape index: {}]   ;;  %s405_s4 = inlined_call_operand.vmem [shape: f32[1,32], index: 4, kind: input, shape index: {}]   ;;  %s406_s5 = inlined_call_operand.vmem [shape: f32[1,32], index: 5, kind: input, shape index: {}]   ;;  %s407_s7 = inlined_call_operand.vmem [shape: f32[8,1], index: 7, kind: output, shape index: {}]  }
   0x1   :  { %280 = vmatprep.subr.bf16.mxu0 %v301_v0  ;;  %v29_v1 = vld [vmem:[%s400_s1] sm:$0xff]  ;;  %v30_v2 = vld [vmem:[%s400_s1 + $0x8] sm:$0xff]  ;;  %v31_v3 = vld [vmem:[%s400_s1 + $0x10] sm:$0xff]  ;;  %258 = vmatprep.mubr.msk.f32.mxu0 %vm302_vm0, %v303_v4  ;;  %vm130_vm2 = vcmask 523264   ;;  %v12_v26 = vstv %s404_s6  ;;  %vm224_vm3 = vcmask 7168  }
   0x2   :  { %v281_v5 = vpack.c.bf16 %v30_v2, %v29_v1  ;;  %v32_v6 = vld [vmem:[%s400_s1 + $0x18] sm:$0xff]  ;;  %286 = vmatprep.subr.bf16.mxu1 %v301_v0  ;;  %v115_v7 = vld [vmem:[%s401_s3] sm:$0xff]  ;;  %277 = vmatprep.mubr.msk.f32.mxu1 %vm302_vm0, %v303_v4  ;;  %v116_v8 = vld [vmem:[%s401_s3 + $0x8] sm:$0xff]  ;;  %13 = vst [vmem:[#allocation2] sm:$0x1] %v12_v26 }
   0x3   :  { %v117_v9 = vld [vmem:[%s401_s3 + $0x10] sm:$0xff]  ;;  %v118_v10 = vld [vmem:[%s401_s3 + $0x18] sm:$0xff]  ;;  %v284_v11 = vpack.c.bf16 %v32_v6, %v31_v3  ;;  %v287_v12 = vpack.c.bf16 %v116_v8, %v115_v7  ;;  %v119_v14 = vld [vmem:[%s401_s3 + $0x20] sm:$0xff] }
   0x4   :  { %282 = vmatpush3.bf16.msra.mxu0 %v281_v5  ;;  %v290_v13 = vpack.c.bf16 %v118_v10, %v117_v9  ;;  %v120_v15 = vld [vmem:[%s401_s3 + $0x28] sm:$0xff]  ;;  %v28_v16 = vld [vmem:[%s402_s0] sm:$0xff]  ;;  %v121_v18 = vld [vmem:[%s401_s3 + $0x30] sm:$0xff] }
   0x5   :  { %283 = vmatprep.subr.bf16.mxu0 %v301_v0  ;;  %288 = vmatpush3.bf16.msra.mxu1 %v287_v12  ;;  %v293_v17 = vpack.c.bf16 %v120_v15, %v119_v14  ;;  %v122_v19 = vld [vmem:[%s401_s3 + $0x38] sm:$0xff]  ;;  %v230_v21 = vld [vmem:[%s403_s2] ss:$0 sm:$0xff] }
   0x6   :  { %289 = vmatprep.subr.bf16.mxu1 %v301_v0  ;;  %v296_v20 = vpack.c.bf16 %v122_v19, %v121_v18  ;;  %v232_v27 = vld [vmem:[%s405_s4] ss:$0 sm:$0xff] }
   0x7   :  { %v234_v31 = vld [vmem:[%s406_s5] ss:$0 sm:$0xff] }
   0x8   :  { %285 = vmatpush3.bf16.msra.mxu0 %v284_v11 }
   0x9   :  { %291 = vmatpush3.bf16.msra.mxu1 %v290_v13  ;;  %v235_v35 = vld [vmem:[#allocation2] ss:$0 sm:$0xff] }
   0xa   :  { %292 = vmatprep.subr.bf16.mxu1 %v301_v0 }
   0xb   :  { %259 = vmatmul.mubr.msk.f32.vlgmr.msra.gmra.mrb[0].mxu0 %vm40_vm1, %v28_v16 }
   0xd   :  { %294 = vmatpush3.bf16.msra.mxu1 %v293_v17 }
   0xe   :  { %295 = vmatprep.subr.bf16.mxu1 %v301_v0 }
  0x11   :  { %297 = vmatpush3.bf16.msra.mxu1 %v296_v20 }
  0xde   :  { %v110_v22 = vpop.f32.mrb[0].mxu0 }
  0xdf   :  { %v111_v23 = vadd.f32 %v230_v21, %v110_v22  ;;  %v260_v24 = vpop.f32.mrb[1].mxu0 }
  0xe1   :  { %v114_v25 = vmax.f32 %v111_v23, 0.0 }
  0xe3   :  { %278 = vmatmul.mubr.msk.f32.vlgmr.msra.gmra.mrb[0].mxu1 %vm130_vm2, %v114_v25 }
 0x1b6   :  { %v200_v28 = vpop.f32.mrb[0].mxu1 }
 0x1b7   :  { %v201_v29 = vadd.f32 %v232_v27, %v200_v28  ;;  %v279_v30 = vpop.f32.mrb[1].mxu1 }
 0x1b9   :  { %v204_v32 = vmax.f32 %v201_v29, 0.0 }
 0x1bb   :  { %v213_v33 = vmul.f32 %v234_v31, %v204_v32 }
 0x1bd   :  { %v214_v34 = vsel %vm40_vm1, %v213_v33, 0.0 }
 0x1be   :  { %215 = vadd.xlane.f32.xlu0 %v214_v34 }
 0x24b   :  { %v216_v36 = vpop.xlane.xlu0 %215 }
 0x24c   :  { %v223_v37 = vadd.f32 %v235_v35, %v216_v36 }
 0x24e   :  { %225 = vst.msk [vmem:[%s407_s7] sm:$0xff] %vm224_vm3, %v223_v37 }

</bundles_post_ra>
